<compile_context>
chip_gen: v5e
topology: v5e:2x2
jax: 0.10.0
libtpu: 0.0.40
codegen_flags: <defaults>
</compile_context>

<pallas_src>
import functools

import jax
import jax.numpy as jnp
from jax.experimental import pallas as pl
from jax.experimental.pallas import tpu as pltpu

_F_IN = 67    # 16 + 1 + 1 + 1 + 16 + 16 + 16
_F_OUT = 73   # 16 + 1 + 48 + 8
_EMB_LO = 65  # door embedding occupies output lanes 65..72


def _roll_lanes_left(v, s):
    """result[:, j] = v[:, (j + s) % L].  Lowers to an XLU lane rotate
    (same hardware op as pltpu.roll, spelled with an explicit direction)."""
    return jnp.concatenate([v[:, s:], v[:, :s]], axis=-1)


def _elev_encoder2_kernel(x_ref, emb_ref, o_ref):
    x = x_ref[...]                                   # (TB, 67) f32
    tb = x.shape[0]

    # Widen to the output lane count; lanes 67..72 are zero.
    x73 = jnp.concatenate(
        [x, jnp.zeros((tb, _F_OUT - _F_IN), jnp.float32)], axis=-1)   # (TB, 73)

    r1 = _roll_lanes_left(x73, 1)                    # r1[:, j] = x[:, j + 1]
    r2 = _roll_lanes_left(x73, 2)                    # r2[:, j] = x[:, j + 2]

    lane = jax.lax.broadcasted_iota(jnp.int32, (tb, _F_OUT), 1)
    # out lanes  0..15 <- x[:,  0:16]  (pos_vec)
    # out lane     16  <- x[:, 17]     (dir)        == r1 lane 16
    # out lanes 17..64 <- x[:, 19:67]  (car/up/dn)  == r2 lanes 17..64
    # out lanes 65..72 <- door embedding (added below)
    main = jnp.where(lane < 16, x73,
                     jnp.where(lane == 16, r1,
                               jnp.where(lane < _EMB_LO, r2, 0.0)))

    # Door embedding: 4 VPU selects against the pre-padded (4, 73) table whose nonzero
    # columns already sit at output lanes 65..72 (zero elsewhere, so the add below
    # cannot disturb lanes 0..64).
    door = x[:, 18:19]                               # (TB, 1), int-valued float 0..3
    table = emb_ref[...]                             # (4, 73)
    emb = jnp.zeros((tb, _F_OUT), jnp.float32)
    for k in range(4):
        row_k = jnp.broadcast_to(table[k:k + 1, :], (tb, _F_OUT))
        hit_k = jnp.abs(door - float(k)) < 0.5       # robust ".long()" of an int-valued float
        emb = emb + jnp.where(hit_k, row_k, 0.0)
    # NOTE: out-of-range door_state (<0 or >3) yields a zero embedding here, whereas
    # torch.nn.Embedding would error / read garbage.

    # Keeping f32 I/O to preserve module semantics; casting to bf16 here would halve
    # HBM traffic if the surrounding model tolerates it.
    o_ref[...] = main + emb


@functools.partial(jax.jit, static_argnames=("tile_b",))
def elev_encoder2_pallas(elev_info: jax.Array, door_emb: jax.Array,
                         *, tile_b: int = 1024) -> jax.Array:
    """elev_info: (B, 67) f32, door_emb: (4, 8) f32 -> (B, 73) f32."""
    B, F = elev_info.shape
    assert F == _F_IN, "elev_info last dim must be 67 (16+1+1+1+16+16+16)"

    # Pre-place the 8 embedding columns at output lanes 65..72.
    emb73 = jnp.zeros((4, _F_OUT), jnp.float32).at[:, _EMB_LO:].set(
        door_emb.astype(jnp.float32))

    # Batch tile: multiple of 8 sublanes (unless one block covers the whole batch).
    # Double-buffered in+out tiles at TB=1024 are ~2 MiB -> plenty of headroom even
    # for v7x's smaller VMEM, while large enough to sit near the HBM roofline.
    tb = min(tile_b, B)
    if tb < B:
        tb = max(8, (tb // 8) * 8)
    n_blocks = pl.cdiv(B, tb)
    b_pad = n_blocks * tb

    x = elev_info.astype(jnp.float32)
    if b_pad != B:
        # Zero tail rows (door index 0 -> valid table row; rows sliced off below).
        x = jnp.pad(x, ((0, b_pad - B), (0, 0)))

    out = pl.pallas_call(
        _elev_encoder2_kernel,
        out_shape=jax.ShapeDtypeStruct((b_pad, _F_OUT), jnp.float32),
        grid=(n_blocks,),
        in_specs=[
            pl.BlockSpec((tb, _F_IN), lambda i: (i, 0)),
            pl.BlockSpec((4, _F_OUT), lambda i: (0, 0)),
        ],
        out_specs=pl.BlockSpec((tb, _F_OUT), lambda i: (i, 0)),
        compiler_params=pltpu.CompilerParams(
            dimension_semantics=("parallel",),    # megacore sharding on v7x; no-op on 1-TC chips
        ),
    )(x, emb73)

    return out[:B] if b_pad != B else out


# ---------------------------------------------------------------------------
# Pure-JAX reference (for sanity checking)
# ---------------------------------------------------------------------------
def elev_encoder2_ref(elev_info, door_emb):
    pos_vec = elev_info[:, 0:16]
    dir_ = elev_info[:, 17:18]
    door_state = elev_info[:, 18].astype(jnp.int32)
    car_call = elev_info[:, 19:35]
    up_call = elev_info[:, 35:51]
    dn_call = elev_info[:, 51:67]
    encode_door = door_emb[door_state]                              # (B, 8)
    return jnp.concatenate(
        [pos_vec, dir_, car_call, up_call, dn_call, encode_door], axis=-1)


if __name__ == "__main__":
    key = jax.random.PRNGKey(0)
    k_feat, k_door, k_emb_door, k_feat2, k_door2 = jax.random.split(key, 5)

    # Parameters (shapes from ElevEncoder2.__init__).
    door_emb = jax.random.normal(k_emb_door, (4, 8), dtype=jnp.float32)   # elev_door_enconder
    # TODO(synk): elev_srv_dir_encoder (Embedding(3, 8)) is unused in forward(); not materialized.

    # Small deterministic batch; door_state column carries integers 0..3 as floats.
    B = 8
    elev_info = jax.random.normal(k_feat, (B, 67), dtype=jnp.float32)
    door_ids = jax.random.randint(k_door, (B,), 0, 4).astype(jnp.float32)
    elev_info = elev_info.at[:, 18].set(door_ids)

    out = jax.block_until_ready(elev_encoder2_pallas(elev_info, door_emb))
    ref = elev_encoder2_ref(elev_info, door_emb)
    assert out.shape == (B, 73), out.shape
    assert jnp.allclose(out, ref, atol=1e-6), "mismatch vs reference (single block)"

    # Exercise the multi-block + tail-padding path at a still-small shape.
    B2 = 37
    elev_info2 = jax.random.normal(k_feat2, (B2, 67), dtype=jnp.float32)
    door_ids2 = jax.random.randint(k_door2, (B2,), 0, 4).astype(jnp.float32)
    elev_info2 = elev_info2.at[:, 18].set(door_ids2)

    out2 = jax.block_until_ready(elev_encoder2_pallas(elev_info2, door_emb, tile_b=16))
    ref2 = elev_encoder2_ref(elev_info2, door_emb)
    assert out2.shape == (B2, 73), out2.shape
    assert jnp.allclose(out2, ref2, atol=1e-6), "mismatch vs reference (tiled + tail)"

    print("KERNEL_OK")
</pallas_src>

<mosaic_0001>
module attributes {stable_mosaic.version = 11 : i64} {
  func.func @_elev_encoder2_kernel(%arg0: i32, %arg1: memref<8x67xf32, #tpu.memory_space<vmem>>, %arg2: memref<4x73xf32, #tpu.memory_space<vmem>>, %arg3: memref<8x73xf32, #tpu.memory_space<vmem>>) attributes {dimension_semantics = [#tpu.dimension_semantics<parallel>], iteration_bounds = array<i64: 1>, scalar_prefetch = 0 : i64, scratch_operands = 0 : i64, tpu.core_type = #tpu.core_type<tc>, window_params = [{transform_indices = @transform_0, window_bounds = array<i64: 8, 67>}, {pipeline_mode = #tpu.pipeline_mode<synchronous>, transform_indices = @transform_1, window_bounds = array<i64: 4, 73>}, {transform_indices = @transform_2, window_bounds = array<i64: 8, 73>}]} {
    %c0 = arith.constant 0 : index
    %c0_0 = arith.constant 0 : index
    %0 = vector.load %arg1[%c0, %c0_0] : memref<8x67xf32, #tpu.memory_space<vmem>>, vector<8x67xf32>
    %cst = arith.constant 0.000000e+00 : f32
    %1 = vector.broadcast %cst : f32 to vector<8x6xf32>
    %2 = tpu.concatenate %0, %1 in 1 : vector<8x67xf32>, vector<8x6xf32> -> vector<8x73xf32>
    %3 = vector.extract_strided_slice %2 {offsets = [0, 1], sizes = [8, 72], strides = [1, 1]} : vector<8x73xf32> to vector<8x72xf32>
    %4 = vector.extract_strided_slice %2 {offsets = [0, 0], sizes = [8, 1], strides = [1, 1]} : vector<8x73xf32> to vector<8x1xf32>
    %5 = tpu.concatenate %3, %4 in 1 : vector<8x72xf32>, vector<8x1xf32> -> vector<8x73xf32>
    %6 = vector.extract_strided_slice %2 {offsets = [0, 2], sizes = [8, 71], strides = [1, 1]} : vector<8x73xf32> to vector<8x71xf32>
    %7 = vector.extract_strided_slice %2 {offsets = [0, 0], sizes = [8, 2], strides = [1, 1]} : vector<8x73xf32> to vector<8x2xf32>
    %8 = tpu.concatenate %6, %7 in 1 : vector<8x71xf32>, vector<8x2xf32> -> vector<8x73xf32>
    %9 = tpu.iota {dimensions = array<i32: 1>} : vector<8x73xi32>
    %c16_i32 = arith.constant 16 : i32
    %10 = vector.broadcast %c16_i32 : i32 to vector<8x73xi32>
    %11 = arith.cmpi slt, %9, %10 : vector<8x73xi32>
    %c16_i32_1 = arith.constant 16 : i32
    %12 = vector.broadcast %c16_i32_1 : i32 to vector<8x73xi32>
    %13 = arith.cmpi eq, %9, %12 : vector<8x73xi32>
    %c65_i32 = arith.constant 65 : i32
    %14 = vector.broadcast %c65_i32 : i32 to vector<8x73xi32>
    %15 = arith.cmpi slt, %9, %14 : vector<8x73xi32>
    %cst_2 = arith.constant 0.000000e+00 : f32
    %16 = vector.broadcast %cst_2 : f32 to vector<8x73xf32>
    %17 = arith.select %15, %8, %16 : vector<8x73xi1>, vector<8x73xf32>
    %18 = arith.select %13, %5, %17 : vector<8x73xi1>, vector<8x73xf32>
    %19 = arith.select %11, %2, %18 : vector<8x73xi1>, vector<8x73xf32>
    %20 = vector.extract_strided_slice %0 {offsets = [0, 18], sizes = [8, 1], strides = [1, 1]} : vector<8x67xf32> to vector<8x1xf32>
    %c0_3 = arith.constant 0 : index
    %c0_4 = arith.constant 0 : index
    %21 = vector.load %arg2[%c0_3, %c0_4] : memref<4x73xf32, #tpu.memory_space<vmem>>, vector<4x73xf32>
    %cst_5 = arith.constant 0.000000e+00 : f32
    %22 = vector.broadcast %cst_5 : f32 to vector<8x73xf32>
    %23 = vector.extract_strided_slice %21 {offsets = [0, 0], sizes = [1, 73], strides = [1, 1]} : vector<4x73xf32> to vector<1x73xf32>
    %24 = vector.shape_cast %23 : vector<1x73xf32> to vector<1x73xf32>
    %25 = vector.broadcast %24 : vector<1x73xf32> to vector<8x73xf32>
    %cst_6 = arith.constant 0.000000e+00 : f32
    %26 = vector.broadcast %cst_6 : f32 to vector<8x1xf32>
    %27 = arith.subf %20, %26 : vector<8x1xf32>
    %28 = math.absf %27 : vector<8x1xf32>
    %cst_7 = arith.constant 5.000000e-01 : f32
    %29 = vector.broadcast %cst_7 : f32 to vector<8x1xf32>
    %30 = arith.cmpf olt, %28, %29 : vector<8x1xf32>
    %cst_8 = arith.constant 0.000000e+00 : f32
    %31 = vector.shape_cast %30 : vector<8x1xi1> to vector<8x1xi1>
    %32 = vector.broadcast %31 : vector<8x1xi1> to vector<8x73xi1>
    %33 = vector.broadcast %cst_8 : f32 to vector<8x73xf32>
    %34 = arith.select %32, %25, %33 : vector<8x73xi1>, vector<8x73xf32>
    %35 = arith.addf %22, %34 : vector<8x73xf32>
    %36 = vector.extract_strided_slice %21 {offsets = [1, 0], sizes = [1, 73], strides = [1, 1]} : vector<4x73xf32> to vector<1x73xf32>
    %37 = vector.shape_cast %36 : vector<1x73xf32> to vector<1x73xf32>
    %38 = vector.broadcast %37 : vector<1x73xf32> to vector<8x73xf32>
    %cst_9 = arith.constant 1.000000e+00 : f32
    %39 = vector.broadcast %cst_9 : f32 to vector<8x1xf32>
    %40 = arith.subf %20, %39 : vector<8x1xf32>
    %41 = math.absf %40 : vector<8x1xf32>
    %cst_10 = arith.constant 5.000000e-01 : f32
    %42 = vector.broadcast %cst_10 : f32 to vector<8x1xf32>
    %43 = arith.cmpf olt, %41, %42 : vector<8x1xf32>
    %cst_11 = arith.constant 0.000000e+00 : f32
    %44 = vector.shape_cast %43 : vector<8x1xi1> to vector<8x1xi1>
    %45 = vector.broadcast %44 : vector<8x1xi1> to vector<8x73xi1>
    %46 = vector.broadcast %cst_11 : f32 to vector<8x73xf32>
    %47 = arith.select %45, %38, %46 : vector<8x73xi1>, vector<8x73xf32>
    %48 = arith.addf %35, %47 : vector<8x73xf32>
    %49 = vector.extract_strided_slice %21 {offsets = [2, 0], sizes = [1, 73], strides = [1, 1]} : vector<4x73xf32> to vector<1x73xf32>
    %50 = vector.shape_cast %49 : vector<1x73xf32> to vector<1x73xf32>
    %51 = vector.broadcast %50 : vector<1x73xf32> to vector<8x73xf32>
    %cst_12 = arith.constant 2.000000e+00 : f32
    %52 = vector.broadcast %cst_12 : f32 to vector<8x1xf32>
    %53 = arith.subf %20, %52 : vector<8x1xf32>
    %54 = math.absf %53 : vector<8x1xf32>
    %cst_13 = arith.constant 5.000000e-01 : f32
    %55 = vector.broadcast %cst_13 : f32 to vector<8x1xf32>
    %56 = arith.cmpf olt, %54, %55 : vector<8x1xf32>
    %cst_14 = arith.constant 0.000000e+00 : f32
    %57 = vector.shape_cast %56 : vector<8x1xi1> to vector<8x1xi1>
    %58 = vector.broadcast %57 : vector<8x1xi1> to vector<8x73xi1>
    %59 = vector.broadcast %cst_14 : f32 to vector<8x73xf32>
    %60 = arith.select %58, %51, %59 : vector<8x73xi1>, vector<8x73xf32>
    %61 = arith.addf %48, %60 : vector<8x73xf32>
    %62 = vector.extract_strided_slice %21 {offsets = [3, 0], sizes = [1, 73], strides = [1, 1]} : vector<4x73xf32> to vector<1x73xf32>
    %63 = vector.shape_cast %62 : vector<1x73xf32> to vector<1x73xf32>
    %64 = vector.broadcast %63 : vector<1x73xf32> to vector<8x73xf32>
    %cst_15 = arith.constant 3.000000e+00 : f32
    %65 = vector.broadcast %cst_15 : f32 to vector<8x1xf32>
    %66 = arith.subf %20, %65 : vector<8x1xf32>
    %67 = math.absf %66 : vector<8x1xf32>
    %cst_16 = arith.constant 5.000000e-01 : f32
    %68 = vector.broadcast %cst_16 : f32 to vector<8x1xf32>
    %69 = arith.cmpf olt, %67, %68 : vector<8x1xf32>
    %cst_17 = arith.constant 0.000000e+00 : f32
    %70 = vector.shape_cast %69 : vector<8x1xi1> to vector<8x1xi1>
    %71 = vector.broadcast %70 : vector<8x1xi1> to vector<8x73xi1>
    %72 = vector.broadcast %cst_17 : f32 to vector<8x73xf32>
    %73 = arith.select %71, %64, %72 : vector<8x73xi1>, vector<8x73xf32>
    %74 = arith.addf %61, %73 : vector<8x73xf32>
    %75 = arith.addf %19, %74 : vector<8x73xf32>
    %c0_18 = arith.constant 0 : index
    %c0_19 = arith.constant 0 : index
    %76 = vector.load %arg3[%c0_18, %c0_19] : memref<8x73xf32, #tpu.memory_space<vmem>>, vector<8x73xf32>
    tpu.vector_store %arg3[%c0_18, %c0_19], %75 {strides = array<i32>} : memref<8x73xf32, #tpu.memory_space<vmem>>, vector<8x73xf32>,
    return
  }
  func.func @transform_0(%arg0: i32) -> (i32, i32) {
    %c0_i32 = arith.constant 0 : i32
    %c0_i32_0 = arith.constant 0 : i32
    return %arg0, %c0_i32 : i32, i32
  }
  func.func @transform_1(%arg0: i32) -> (i32, i32) {
    %c0_i32 = arith.constant 0 : i32
    %c0_i32_0 = arith.constant 0 : i32
    %c0_i32_1 = arith.constant 0 : i32
    return %c0_i32, %c0_i32_0 : i32, i32
  }
  func.func @transform_2(%arg0: i32) -> (i32, i32) {
    %c0_i32 = arith.constant 0 : i32
    %c0_i32_0 = arith.constant 0 : i32
    return %arg0, %c0_i32 : i32, i32
  }
}

</mosaic_0001>

<bundles_post_ra>
// kernel: elev_encoder2_pallas.1
= control target key start
LH: loop header
LB: loop body
LE: loop exit
PB: predicated region body
PF: predicated region fallthrough
CT: control target
= control target key end

     0   :  { %vm13_vm0 = vcmask 547840   ;;  %v142_v1 = vmov 18   ;;  %s180_s0 = inlined_call_operand.vmem [shape: f32[8,67], index: 0, kind: input, shape index: {}]   ;;  %s181_s1 = inlined_call_operand.vmem [shape: f32[4,73], index: 1, kind: input, shape index: {}]   ;;  %s182_s2 = inlined_call_operand.hbm [shape: f32[8,73], index: 2, kind: output, shape index: {}]  }
   0x1   :  { %v12_v0 = vld [vmem:[%s180_s0] sm:$0xff]  ;;  %113 = vset.pattern.permute.xlu0 %v142_v1  ;;  %114 = vset.pattern.permute.xlu1 %v142_v1 }
   0x2   :  { %v42_v2 = vand.u32 2147483647, %v12_v0  ;;  %v104_v3 = vadd.f32 -2.0, %v12_v0  ;;  %v103_v4 = vadd.f32 -1.0, %v12_v0  ;;  %v167_v5 = vsel %vm13_vm0, %v12_v0, 0.0  ;;  %115 = vset.pattern.permute.xlu2 %v142_v1 }
   0x3   :  { %v105_v6 = vadd.f32 -3.0, %v12_v0 }
   0x4   :  { %7 = vsyncpa [#allocation3], 0  ;;  %vm43_vm1 = vcmp.lt.f32.partialorder %v42_v2, 0.5  ;;  %v64_v7 = vand.u32 2147483647, %v104_v3  ;;  %s143_s11 = smov 71   ;;  %v32_v22 = vlaneseq }
   0x5   :  { %v53_v8 = vand.u32 2147483647, %v103_v4  ;;  %27 = vrot.lane.b32.xlu2 %v167_v5, %s143_s11  ;;  %v144_v9 = vmov 0   ;;  %v75_v11 = vand.u32 2147483647, %v105_v6  ;;  %s145_s0 = smov 126  }
   0x6   :  { %v44_v10 = vsel %vm43_vm1, 1, %v144_v9  ;;  %vm65_vm2 = vcmp.lt.f32.partialorder %v64_v7, 0.5  ;;  %s146_s12 = smov 127   ;;  %s147_s13 = smov 72   ;;  %v40_v18 = vld [vmem:[%s181_s1] sm:$0xf] }
   0x7   :  { %46 = vperm.xlu0 %113, %v44_v10   ;;  %v66_v12 = vsel %vm65_vm2, 1, %v144_v9  ;;  %vm76_vm3 = vcmp.lt.f32.partialorder %v75_v11, 0.5  ;;  %vm54_vm4 = vcmp.lt.f32.partialorder %v53_v8, 0.5  ;;  %v51_v19 = vperm.slane %v40_v18, 1  ;;  %s148_s1 = smov [#allocation2]   ;;  %s94_s19 = sshll.u32 %s182_s2, 4  ;;  %s95_s19 = int_to_ptr.hbm [resolvable:$true] %s94_s19 }
   0x8   :  { %68 = vperm.xlu1 %114, %v66_v12   ;;  %v77_v13 = vsel %vm76_vm3, 1, %v144_v9  ;;  %v55_v14 = vsel %vm54_vm4, 1, %v144_v9  ;;  %v41_v20 = vperm.slane %v40_v18, 0  ;;  %v62_v26 = vperm.slane %v40_v18, 2  ;;  %s92_s16 = sshll.u32 %s148_s1, 4  ;;  %s93_s16 = int_to_ptr.vmem [resolvable:$true] %s92_s16 }
   0x9   :  { %v33_v29 = vand.u32 127, %v32_v22  ;;  %vm30_vm8 = vcmask 580608   ;;  %v73_v30 = vperm.slane %v40_v18, 3  ;;  %vm22_vm11 = vcmask 588800  }
   0xa   :  { %vm85_vm14 = vcmask 596992  }
   0xb   :  { %vm36_vm10 = vcmp.lt.s32.totalorder %v33_v29, 65  ;;  %vm35_vm12 = vcmp.eq.s32.totalorder %v33_v29, 16  ;;  %vm34_vm13 = vcmp.lt.s32.totalorder %v33_v29, 16 }
   0xd   :  { %79 = vperm.xlu2 %115, %v77_v13  }
   0xf   :  { %57 = vperm.xlu0 %113, %v55_v14  }
  0x10   :  { %24 = vrot.lane.b32.xlu1 %v167_v5, %s145_s0 }
  0x17   :  { %16 = vrot.lane.b32.xlu0 %v167_v5, %s146_s12 }
  0x18   :  { %19 = vrot.lane.b32.xlu1 %v167_v5, %s147_s13 }
  0x5f   :  { %v28_v16 = vpop.permute.xlu2 %27 }
  0x67   :  { %v80_v27 = vpop.permute.xlu2 %79 }
  0x68   :  { %vm81_vm9 = vcmp.eq.s32.totalorder %v80_v27, 1 }
  0x69   :  { %v82_v35 = vsel %vm81_vm9, %v73_v30, 0.0 }
  0x79   :  { %v47_v15 = vpop.permute.xlu0 %46 }
  0x7a   :  { %v69_v17 = vpop.permute.xlu1 %68  ;;  %vm48_vm5 = vcmp.eq.s32.totalorder %v47_v15, 1 }
  0x7b   :  { %v49_v25 = vsel %vm48_vm5, %v41_v20, 0.0  ;;  %vm70_vm7 = vcmp.eq.s32.totalorder %v69_v17, 1 }
  0x7c   :  { %v71_v31 = vsel %vm70_vm7, %v62_v26, 0.0 }
  0x81   :  { %v58_v21 = vpop.permute.xlu0 %57 }
  0x82   :  { %vm59_vm6 = vcmp.eq.s32.totalorder %v58_v21, 1  ;;  %v25_v24 = vpop.permute.xlu1 %24 }
  0x83   :  { %v60_v23 = vsel %vm59_vm6, %v51_v19, 0.0  ;;  %v31_v32 = vsel %vm30_vm8, %v25_v24, %v28_v16 }
  0x84   :  { %v61_v28 = vadd.f32 %v60_v23, %v49_v25  ;;  %v37_v37 = vsel %vm36_vm10, %v31_v32, 0.0 }
  0x86   :  { %v72_v33 = vadd.f32 %v71_v31, %v61_v28 }
  0x88   :  { %v83_v39 = vadd.f32 %v82_v35, %v72_v33 }
  0x89   :  { %v17_v34 = vpop.permute.xlu0 %16 }
  0x8a   :  { %v20_v36 = vpop.permute.xlu1 %19 }
  0x8b   :  { %v23_v38 = vsel %vm22_vm11, %v17_v34, %v20_v36 }
  0x8c   :  { %v38_v40 = vsel %vm35_vm12, %v23_v38, %v37_v37 }
  0x8d   :  { %v39_v41 = vsel %vm34_vm13, %v167_v5, %v38_v40 }
  0x8e   :  { %v84_v42 = vadd.f32 %v83_v39, %v39_v41 }
  0x90   :  { %86 = vst.msk [vmem:[#allocation2] sm:$0xff] %vm85_vm14, %v84_v42 }
  0x91   :  { %97 = dma.vmem_to_hbm [thread:$0]  %s93_s16, 128, %s95_s19, [#allocation3]  }
  0x92   :  { %140 = dma.done.wait [#allocation3], 128  }
  0x93   :  { %141 = vsyncadd [#allocation3], 4294967168 }
  0x94   :  { %102 = vsyncpa [#allocation3], 1 }

</bundles_post_ra>
